<compile_context>
chip_gen: v7x
topology: tpu7x:2x2x1
jax: 0.10.0
libtpu: 0.0.40
codegen_flags: <defaults>
</compile_context>

<pallas_src>
import functools

import jax
import jax.numpy as jnp
from jax.experimental import pallas as pl
from jax.experimental.pallas import tpu as pltpu


# ----------------------------- kernels --------------------------------------


def _cam_fused_kernel(gamma_ref, x_ref, o_ref):
    """One batch block: Gram -> softmax -> apply -> residual, all in VMEM."""
    x = x_ref[...].astype(jnp.float32)                       # (bb, C, N)
    energy = jax.lax.dot_general(                            # (bb, C, C)
        x, x, (((2,), (2,)), ((0,), (0,))),
        preferred_element_type=jnp.float32)
    # softmax(rowmax(E) - E) == exp(rowmin(E) - E) / sum(...)
    e_min = jnp.min(energy, axis=-1, keepdims=True)
    p = jnp.exp(e_min - energy)
    denom = jnp.sum(p, axis=-1, keepdims=True)
    attn = p * (gamma_ref[0] / denom)                        # gamma folded in
    out = jax.lax.dot_general(                               # (bb, C, N)
        attn, x, (((2,), (1,)), ((0,), (0,))),
        preferred_element_type=jnp.float32) + x
    o_ref[...] = out.astype(o_ref.dtype)


def _cam_energy_kernel(gamma_ref, *refs, n_total, tile_n, ragged, split_rows):
    """Pass A: accumulate E = x @ x^T over spatial tiles; finalize to
    gamma * softmax(rowmax(E) - E)  (== gamma * exp(rowmin(E) - E) / sum)."""
    if split_rows:
        xl_ref, xr_ref, attn_ref = refs
    else:
        xl_ref, attn_ref = refs
        xr_ref = None

    n = pl.program_id(2)

    @pl.when(n == 0)
    def _init():
        attn_ref[...] = jnp.zeros(attn_ref.shape, attn_ref.dtype)

    def load_tile(ref):
        t = ref[0].astype(jnp.float32)
        if ragged:
            # Mask garbage lanes of the (statically known) ragged last tile;
            # both operands are masked so stale NaN/Inf lanes cannot poison
            # the accumulation via 0 * NaN.
            lane = jax.lax.broadcasted_iota(jnp.int32, t.shape, 1)
            t = jnp.where(n * tile_n + lane < n_total, t, 0.0)
        return t

    xl = load_tile(xl_ref)                                   # (tc, tn)
    xr = xl if xr_ref is None else load_tile(xr_ref)         # (C,  tn)
    # Gram accumulation on the MXU, contracting the lane (spatial) dim of both
    # operands -> no in-kernel transpose needed.
    attn_ref[0] += jax.lax.dot_general(
        xl, xr, (((1,), (1,)), ((), ())), preferred_element_type=jnp.float32)

    @pl.when(n == pl.num_programs(2) - 1)
    def _finalize():
        energy = attn_ref[0]                                 # (tc, C)
        e_min = jnp.min(energy, axis=-1, keepdims=True)
        p = jnp.exp(e_min - energy)
        denom = jnp.sum(p, axis=-1, keepdims=True)
        # Fold gamma in once per batch (C*C muls) instead of per spatial tile.
        attn_ref[0] = p * (gamma_ref[0] / denom)


def _cam_apply_kernel(attn_ref, x_ref, o_ref):
    """Pass B: out_tile = (gamma * attention) @ x_tile + x_tile, in x.dtype."""
    x_t = x_ref[0].astype(jnp.float32)                       # (C, tn)
    out = jax.lax.dot_general(
        attn_ref[0], x_t, (((1,), (0,)), ((), ())),
        preferred_element_type=jnp.float32) + x_t
    # (Perf knob, unused: bf16 matmul operands with f32 accumulate would give
    # 2-4x MXU rate on v6e/v7x once pass B is compute-bound at large C.)
    o_ref[0] = out.astype(o_ref.dtype)


# ----------------------------- wrapper ---------------------------------------


def _vmem_budget_bytes():
    """Per-TensorCore VMEM budget with headroom for compiler scratch."""
    cap = None
    try:
        cap = getattr(pltpu.get_tpu_info(), "vmem_capacity_bytes", None)
    except Exception:
        cap = None
    if not cap:
        cap = 64 * 1024 * 1024  # conservative default: v7x per-TC VMEM
    # ~78% of physical: ~50 MiB on v7x, ~100 MiB on v5e/v6e.  Never hand the
    # compiler the full physical VMEM.
    return max(24 * 1024 * 1024, int(cap * 0.78))


def _pick_tile_n(N, C, tc, isz, budget):
    """Largest lane-dense (multiple-of-128) spatial tile fitting the budget."""
    f32 = 4
    # Per-lane VMEM cost (worst of the two passes): double-buffered
    # native-dtype x/out tiles + in-kernel f32 copies.
    per_lane = C * (4 * isz + 3 * f32) + tc * (2 * isz + f32)
    # Fixed (C, C)-sized buffers: Gram accumulator/output + softmax temps +
    # pass-B attention operand.
    fixed = (4 * tc * C + 3 * C * C) * f32 + (1 << 20)
    avail = max(int(0.85 * budget) - fixed, 0)
    tn = (avail // max(per_lane, 1)) // 128 * 128
    n_up = -(-N // 128) * 128
    return max(128, min(tn, min(n_up, 4096)))


def cam_module(x, gamma, *, tile_n=None, row_block=None, force_two_pass=False,
               vmem_budget_bytes=None):
    """Channel Attention Module forward: gamma * (softmax(E') @ x) + x.

    Args:
      x: (B, C, W, H) feature maps (any float dtype; streamed in native dtype).
      gamma: scalar-like (shape (1,)) learnable parameter.
      tile_n / row_block / force_two_pass / vmem_budget_bytes: tuning overrides.
    Returns:
      (B, C, W, H) array with the same dtype as x.
    """
    B, C, W, H = x.shape
    N = W * H
    x_flat = x.reshape(B, C, N)                 # metadata-only reshape
    dtype = x_flat.dtype
    isz = dtype.itemsize
    f32 = 4

    budget = (_vmem_budget_bytes() if vmem_budget_bytes is None
              else int(vmem_budget_bytes))
    gamma_arr = jnp.asarray(gamma, jnp.float32).reshape(1)

    # ------------------------ fused single-pass path ------------------------
    # VMEM per batch: double-buffered in/out blocks in native dtype + in-kernel
    # f32 copies of x/out + a few (C, C) f32 temporaries.
    per_batch = C * N * (4 * isz + 2 * f32) + 4 * C * C * f32
    if not force_two_pass and per_batch <= 0.8 * budget:
        bb = max(1, min(B, int((0.8 * budget) // per_batch)))
        out_flat = pl.pallas_call(
            _cam_fused_kernel,
            out_shape=jax.ShapeDtypeStruct((B, C, N), dtype),
            grid_spec=pltpu.PrefetchScalarGridSpec(
                num_scalar_prefetch=0,
                grid=(pl.cdiv(B, bb),),
                in_specs=[
                    pl.BlockSpec(memory_space=pltpu.MemorySpace.SMEM),   # gamma
                    pl.BlockSpec((bb, C, N), lambda i: (i, 0, 0)),       # x
                ],
                out_specs=pl.BlockSpec((bb, C, N), lambda i: (i, 0, 0)),
            ),
            compiler_params=pltpu.CompilerParams(
                dimension_semantics=("parallel",),
                vmem_limit_bytes=int(budget),
            ),
            cost_estimate=pl.CostEstimate(
                flops=int(4 * B * C * C * N + 2 * B * C * N),
                transcendentals=int(B * C * C),
                bytes_accessed=int(2 * isz * B * C * N),
            ),
        )(gamma_arr, x_flat)
        return out_flat.reshape(B, C, W, H)

    # ---------------------- two-pass fallback (large C*N) -------------------
    if row_block is None:
        # Split Gram rows only when batch parallelism alone cannot feed both
        # v7x TensorCores and the split stays 8-sublane aligned; otherwise the
        # split just re-reads the RHS x tiles once per row block.
        tc = C // 2 if (B < 2 and C >= 512 and C % 16 == 0) else C
    else:
        tc = int(row_block)
    assert C % tc == 0, "row_block must divide C"

    if tile_n is None:
        tn = _pick_tile_n(N, C, tc, isz, budget)
    else:
        assert tile_n % 128 == 0, "tile_n must be a multiple of 128"
        tn = int(tile_n)
    n_tiles = pl.cdiv(N, tn)
    ragged = (N % tn) != 0
    split_rows = tc != C

    # ---- pass A: attn = gamma * softmax(rowmax(E) - E),  E = x @ x^T -------
    energy_kernel = functools.partial(
        _cam_energy_kernel, n_total=N, tile_n=tn, ragged=ragged,
        split_rows=split_rows)
    x_in_specs = [pl.BlockSpec((1, tc, tn), lambda b, ci, n: (b, ci, n))]
    x_args = [x_flat]
    if split_rows:
        x_in_specs.append(pl.BlockSpec((1, C, tn), lambda b, ci, n: (b, 0, n)))
        x_args.append(x_flat)

    attn = pl.pallas_call(
        energy_kernel,
        out_shape=jax.ShapeDtypeStruct((B, C, C), jnp.float32),
        grid_spec=pltpu.PrefetchScalarGridSpec(
            num_scalar_prefetch=0,
            grid=(B, C // tc, n_tiles),
            in_specs=[pl.BlockSpec(memory_space=pltpu.MemorySpace.SMEM)]
                     + x_in_specs,
            out_specs=pl.BlockSpec((1, tc, C), lambda b, ci, n: (b, ci, 0)),
        ),
        compiler_params=pltpu.CompilerParams(
            dimension_semantics=("parallel", "parallel", "arbitrary"),
            vmem_limit_bytes=int(budget),
        ),
        cost_estimate=pl.CostEstimate(
            flops=int(2 * B * C * C * N),
            transcendentals=int(B * C * C),
            bytes_accessed=int((2 if split_rows else 1) * isz * B * C * N
                               + 4 * B * C * C),
        ),
    )(gamma_arr, *x_args)

    # ---- pass B: out = (gamma * attn) @ x + x -------------------------------
    # The (C, C) attention block is constant across the inner spatial axis;
    # single-buffer it once it is big enough for double-buffering to matter
    # (saves C*C*4 bytes of VMEM -- half of v7x's budget at C = 2048).
    if 2 * C * C * f32 >= (4 << 20):
        attn_spec = pl.BlockSpec((1, C, C), lambda b, n: (b, 0, 0),
                                 pipeline_mode=pl.Buffered(1))
    else:
        attn_spec = pl.BlockSpec((1, C, C), lambda b, n: (b, 0, 0))

    out_flat = pl.pallas_call(
        _cam_apply_kernel,
        out_shape=jax.ShapeDtypeStruct((B, C, N), dtype),
        grid_spec=pltpu.PrefetchScalarGridSpec(
            num_scalar_prefetch=0,
            grid=(B, n_tiles),
            in_specs=[
                attn_spec,
                pl.BlockSpec((1, C, tn), lambda b, n: (b, 0, n)),
            ],
            out_specs=pl.BlockSpec((1, C, tn), lambda b, n: (b, 0, n)),
        ),
        compiler_params=pltpu.CompilerParams(
            dimension_semantics=("parallel", "parallel"),
            vmem_limit_bytes=int(budget),
        ),
        cost_estimate=pl.CostEstimate(
            flops=int(2 * B * C * C * N + 2 * B * C * N),
            transcendentals=0,
            bytes_accessed=int(2 * isz * B * C * N + 4 * B * C * C),
        ),
    )(attn, x_flat)
    return out_flat.reshape(B, C, W, H)


def cam_module_ref(x, gamma):
    """Pure-JAX reference mirroring the PyTorch forward (f32 math)."""
    B, C, W, H = x.shape
    xf = x.reshape(B, C, -1).astype(jnp.float32)
    energy = jnp.einsum("bcn,bdn->bcd", xf, xf)
    energy_new = jnp.max(energy, axis=-1, keepdims=True) - energy
    attention = jax.nn.softmax(energy_new, axis=-1)
    out = jnp.einsum("bcd,bdn->bcn", attention, xf)
    out = jnp.asarray(gamma, jnp.float32).reshape(()) * out + xf
    return out.reshape(B, C, W, H)


if __name__ == "__main__":
    key = jax.random.PRNGKey(0)
    k1, k2 = jax.random.split(key, 2)

    # Case 1: fused single-pass path, gamma == 0 (module init) -> out == x.
    B, C, W, H = 2, 4, 16, 16
    x1 = jax.random.normal(k1, (B, C, W, H), dtype=jnp.float32)
    gamma0 = jnp.zeros((1,), dtype=jnp.float32)
    out1 = jax.block_until_ready(cam_module(x1, gamma0))
    assert out1.shape == (B, C, W, H) and out1.dtype == x1.dtype
    assert jnp.allclose(out1, x1, atol=1e-6, rtol=0)

    # Case 2: fused path, nonzero gamma, vs pure-JAX reference.
    gamma1 = jnp.asarray([0.5], dtype=jnp.float32)
    out2 = jax.block_until_ready(cam_module(x1, gamma1))
    ref2 = cam_module_ref(x1, gamma1)
    assert jnp.allclose(out2, ref2, atol=2e-3, rtol=2e-3), float(
        jnp.max(jnp.abs(out2 - ref2)))

    # Case 3: two-pass fallback with a multi-tile energy reduction, a ragged
    # last spatial tile (N = 192 vs tn = 128, masked in-kernel) and the
    # row-split Gram path (C = 16, row_block = 8).
    B3, C3, W3, H3 = 3, 16, 16, 12
    x3 = jax.random.normal(k2, (B3, C3, W3, H3), dtype=jnp.float32)
    gamma2 = jnp.asarray([0.75], dtype=jnp.float32)
    ref3 = cam_module_ref(x3, gamma2)
    out3 = jax.block_until_ready(
        cam_module(x3, gamma2, force_two_pass=True, tile_n=128, row_block=8))
    assert jnp.allclose(out3, ref3, atol=2e-3, rtol=2e-3), float(
        jnp.max(jnp.abs(out3 - ref3)))
    # Same fallback without the row split (tc == C, single x operand).
    out3b = jax.block_until_ready(
        cam_module(x3, gamma2, force_two_pass=True, tile_n=128))
    assert jnp.allclose(out3b, ref3, atol=2e-3, rtol=2e-3), float(
        jnp.max(jnp.abs(out3b - ref3)))

    # Case 4: bf16 input streamed natively (cast to f32 only inside the
    # kernel), bf16 output written directly.
    x4 = x1.astype(jnp.bfloat16)
    out4 = jax.block_until_ready(cam_module(x4, gamma1))
    assert out4.dtype == jnp.bfloat16
    ref4 = cam_module_ref(x4, gamma1)
    assert jnp.allclose(out4.astype(jnp.float32), ref4, atol=5e-2, rtol=5e-2)

    print("KERNEL_OK")
</pallas_src>

<mosaic_0001>
module attributes {stable_mosaic.version = 11 : i64} {
  func.func @_cam_fused_kernel(%arg0: i32, %arg1: memref<1xf32, #tpu.memory_space<smem>>, %arg2: memref<2x4x256xf32, #tpu.memory_space<vmem>>, %arg3: memref<2x4x256xf32, #tpu.memory_space<vmem>>) attributes {dimension_semantics = [#tpu.dimension_semantics<parallel>], iteration_bounds = array<i64: 1>, scalar_prefetch = 0 : i64, scratch_operands = 0 : i64, tpu.core_type = #tpu.core_type<tc>, window_params = [{transform_indices = @transform_0, window_bounds = array<i64: 1>}, {transform_indices = @transform_1, window_bounds = array<i64: 2, 4, 256>}, {transform_indices = @transform_2, window_bounds = array<i64: 2, 4, 256>}]} {
    %c0 = arith.constant 0 : index
    %c0_0 = arith.constant 0 : index
    %c0_1 = arith.constant 0 : index
    %0 = vector.load %arg2[%c0, %c0_0, %c0_1] : memref<2x4x256xf32, #tpu.memory_space<vmem>>, vector<2x4x256xf32>
    %cst = arith.constant dense<0.000000e+00> : vector<2x4x4xf32>
    %1 = tpu.matmul %0, %0, %cst {dimension_numbers = #tpu.dot_dimension_numbers<[2], [2], [1], [1], [0, 0, 0, 1, 1, 1], [0], [0]>} : vector<2x4x256xf32>, vector<2x4x256xf32>, vector<2x4x4xf32> -> vector<2x4x4xf32>
    %cst_2 = arith.constant dense<0x7F800000> : vector<2x4xf32>
    %2 = vector.multi_reduction <minimumf>, %1, %cst_2 [2] : vector<2x4x4xf32> to vector<2x4xf32>
    %3 = vector.shape_cast %2 : vector<2x4xf32> to vector<2x4x1xf32>
    %4 = vector.broadcast %3 : vector<2x4x1xf32> to vector<2x4x4xf32>
    %5 = arith.subf %4, %1 : vector<2x4x4xf32>
    %6 = math.exp %5 : vector<2x4x4xf32>
    %cst_3 = arith.constant dense<0.000000e+00> : vector<2x4xf32>
    %7 = vector.multi_reduction <add>, %6, %cst_3 [2] : vector<2x4x4xf32> to vector<2x4xf32>
    %8 = vector.shape_cast %7 : vector<2x4xf32> to vector<2x4x1xf32>
    %c0_4 = arith.constant 0 : index
    %9 = memref.load %arg1[%c0_4] : memref<1xf32, #tpu.memory_space<smem>>
    %10 = vector.broadcast %9 : f32 to vector<2x4x1xf32>
    %11 = arith.divf %10, %8 : vector<2x4x1xf32>
    %12 = vector.broadcast %11 : vector<2x4x1xf32> to vector<2x4x4xf32>
    %13 = arith.mulf %6, %12 : vector<2x4x4xf32>
    %cst_5 = arith.constant dense<0.000000e+00> : vector<2x4x256xf32>
    %14 = tpu.matmul %13, %0, %cst_5 {dimension_numbers = #tpu.dot_dimension_numbers<[2], [1], [1], [2], [0, 0, 0, 1, 1, 2], [0], [0]>} : vector<2x4x4xf32>, vector<2x4x256xf32>, vector<2x4x256xf32> -> vector<2x4x256xf32>
    %15 = arith.addf %14, %0 : vector<2x4x256xf32>
    %c0_6 = arith.constant 0 : index
    %c0_7 = arith.constant 0 : index
    %c0_8 = arith.constant 0 : index
    %16 = vector.load %arg3[%c0_6, %c0_7, %c0_8] : memref<2x4x256xf32, #tpu.memory_space<vmem>>, vector<2x4x256xf32>
    tpu.vector_store %arg3[%c0_6, %c0_7, %c0_8], %15 {strides = array<i32>} : memref<2x4x256xf32, #tpu.memory_space<vmem>>, vector<2x4x256xf32>,
    return
  }
  func.func @transform_0(%arg0: i32) -> i32 {
    %c0_i32 = arith.constant 0 : i32
    %c0_i32_0 = arith.constant 0 : i32
    return %c0_i32 : i32
  }
  func.func @transform_1(%arg0: i32) -> (i32, i32, i32) {
    %c0_i32 = arith.constant 0 : i32
    %c0_i32_0 = arith.constant 0 : i32
    %c0_i32_1 = arith.constant 0 : i32
    return %arg0, %c0_i32, %c0_i32_0 : i32, i32, i32
  }
  func.func @transform_2(%arg0: i32) -> (i32, i32, i32) {
    %c0_i32 = arith.constant 0 : i32
    %c0_i32_0 = arith.constant 0 : i32
    %c0_i32_1 = arith.constant 0 : i32
    return %arg0, %c0_i32, %c0_i32_0 : i32, i32, i32
  }
}

</mosaic_0001>

<bundles_post_ra>
// kernel: tpu_custom_call.1
= control target key start
LH: loop header
LB: loop body
LE: loop exit
PB: predicated region body
PF: predicated region fallthrough
CT: control target
= control target key end

     0   :  { %8 = vsyncpa [#allocation4], 0  ;;  %s519_s0 = inlined_call_operand.<no memory space> [shape: f32[1], index: 0, kind: input, shape index: {}]   ;;  %s520_s1 = inlined_call_operand.hbm [shape: f32[2,4,256], index: 1, kind: input, shape index: {}]   ;;  %s521_s2 = inlined_call_operand.hbm [shape: f32[2,4,256], index: 2, kind: output, shape index: {}]  }
   0x1   :  { %9 = vsyncpa [#allocation5], 0  ;;  %s456_s9 = smov [#allocation3]   ;;  %s408_s13 = scalar_lea.hbm %s520_s1, 256 }
   0x2   :  { %s17_s10 = sshll.u32 %s456_s9, 4  ;;  %p409_p0 = scmp.ne.s32.totalorder %s520_s1, %s408_s13  ;;  %s18_s10 = int_to_ptr.vmem [resolvable:$true] %s17_s10 }
   0x3   :  { %p412_p1 = scmp.lt.u32.totalorder %s408_s13, %s520_s1 }
   0x5   :  { %p414_p2 = pnand %p412_p1, %p409_p0 }
   0x7   :  { %417 = shalt.err (!%p414_p2)
}
   0x8   :  { %s418_s18 = scalar_lea.vmem %s18_s10, 256  ;;  %p423_p4 = scmp.lt.s32.totalorder %s18_s10, %s18_s10 }
   0x9   :  { %p419_p3 = scmp.ne.s32.totalorder %s18_s10, %s418_s18  ;;  %p424_p5 = scmp.lt.s32.totalorder %s418_s18, %s418_s18 }
   0xb   :  { %p425_p6 = por %p424_p5, %p423_p4 }
   0xd   :  { %p426_p7 = pnand %p425_p6, %p419_p3 }
   0xf   :  { %429 = shalt.err (!%p426_p7)
}
  0x10   :  { %s457_s19 = smov 128   ;;  %s458_s20 = smov 8  }
  0x11   :  { %23 = dma.hbm_to_vmem [thread:$0]  %s520_s1, 256, %s18_s10, [#allocation4], %s457_s19, %s457_s19, %s458_s20  }
  0x12   :  { %452 = dma.done.wait [#allocation4], 256  }
  0x13   :  { %453 = vsyncadd [#allocation4], 4294967040  ;;  %v27_v0 = vld [vmem:[#allocation3] sm:$0xff]  ;;  %v28_v1 = vld [vmem:[#allocation3 + $0x8] sm:$0xff]  ;;  %vm175_vm0 = vcmask 27648   ;;  %vm206_vm1 = vcmask 1043456   ;;  %v195_v23 = vstv %s519_s0 }
  0x14   :  { %v30_v2 = vcombine.high %v27_v0, %v27_v0  ;;  %v491_v3 = vcombine.high %v28_v1, %v28_v1  ;;  %v459_v20 = vmov 0.0   ;;  %vm202_vm2 = vcmask 31744   ;;  %s460_s24 = smov [#allocation6]  }
  0x15   :  { %s375_s25 = sshll.u32 %s460_s24, 4  ;;  %s376_s25 = int_to_ptr.vmem [resolvable:$true] %s375_s25 }
  0x16   :  { %32 = vmatprep.subr.mxu0 %v30_v2  ;;  %96 = vmatprep.mubr.f32.mxu0 %v30_v2  ;;  %s430_s0 = scalar_lea.vmem %s376_s25, 256  ;;  %p435_p9 = scmp.lt.s32.totalorder %s376_s25, %s376_s25 }
  0x17   :  { %33 = vmatpush1.xpose.msra.mxu0 %v27_v0  ;;  %105 = vmatprep.subr.mxu1 %v491_v3  ;;  %p431_p8 = scmp.ne.s32.totalorder %s376_s25, %s430_s0  ;;  %p436_p10 = scmp.lt.s32.totalorder %s430_s0, %s430_s0 }
  0x18   :  { %106 = vmatpush1.xpose.msra.mxu1 %v28_v1  ;;  %169 = vmatprep.mubr.f32.mxu1 %v491_v3 }
  0x19   :  { %387 = vmatprep.subr.msk.mxu0 %vm206_vm1, %v30_v2  ;;  %390 = vmatprep.subr.msk.mxu1 %vm206_vm1, %v491_v3  ;;  %p437_p11 = por %p436_p10, %p435_p9 }
  0x1a   :  { %97 = vmatmul.mubr.f32.vlgmr.msra.gmra.mrb[0].mxu0 %v27_v0 }
  0x1b   :  { %170 = vmatmul.mubr.f32.vlgmr.msra.gmra.mrb[0].mxu1 %v28_v1  ;;  %388 = vmatpush1.msk.msra.mxu0 %vm206_vm1, %v27_v0  ;;  %p438_p12 = pnand %p437_p11, %p431_p8 }
  0x1c   :  { %275 = vmatprep.mubr.f32.mxu0 %v459_v20  ;;  %391 = vmatpush1.msk.msra.mxu1 %vm206_vm1, %v28_v1 }
  0x1d   :  { %353 = vmatprep.mubr.f32.mxu1 %v459_v20 }
  0xed   :  { %v98_v4 = vpop.f32.mrb[0].mxu0 }
  0xee   :  { %v100_v5 = vpop.f32.mrb[1].mxu0  ;;  %v176_v6 = vsel %vm175_vm0, %v98_v4, inf  ;;  %v171_v7 = vpop.f32.mrb[0].mxu1 }
  0xef   :  { %177 = vmin.xlane.f32.xlu0 %v176_v6  ;;  %v173_v8 = vpop.f32.mrb[1].mxu1  ;;  %v179_v9 = vsel %vm175_vm0, %v171_v7, inf }
  0xf3   :  { %180 = vmin.xlane.f32.xlu0 %v179_v9 }
 0x17c   :  { %v178_v10 = vpop.xlane.xlu0 %177 }
 0x17d   :  { %v182_v11 = vsub.f32 %v178_v10, %v98_v4 }
 0x17f   :  { %v184_v12 = vmul.f32 1.442695, %v182_v11 }
 0x180   :  { %v181_v13 = vpop.xlane.xlu0 %180 }
 0x181   :  { %400 = vpow2.f32 %v184_v12  ;;  %v183_v14 = vsub.f32 %v181_v13, %v171_v7 }
 0x183   :  { %v186_v15 = vmul.f32 1.442695, %v183_v14 }
 0x185   :  { %402 = vpow2.f32 %v186_v15 }
 0x18b   :  { %v401_v16 = vpop.eup %400 }
 0x18c   :  { %v188_v17 = vsel %vm175_vm0, %v401_v16, 0.0 }
 0x18d   :  { %189 = vadd.xlane.f32.xlu1 %v188_v17 }
 0x18f   :  { %v403_v18 = vpop.eup %402 }
 0x190   :  { %v191_v19 = vsel %vm175_vm0, %v403_v18, 0.0 }
 0x191   :  { %192 = vadd.xlane.f32.xlu1 %v191_v19 }
 0x21a   :  { %v190_v21 = vpop.xlane.xlu1 %189 }
 0x21b   :  { %404 = vrcp.f32 %v190_v21 }
 0x21e   :  { %v193_v22 = vpop.xlane.xlu1 %192 }
 0x21f   :  { %406 = vrcp.f32 %v193_v22 }
 0x225   :  { %v405_v24 = vpop.eup %404 }
 0x226   :  { %v197_v25 = vmul.f32 %v405_v24, %v195_v23 }
 0x228   :  { %v200_v26 = vmul.f32 %v401_v16, %v197_v25 }
 0x229   :  { %v407_v27 = vpop.eup %406 }
 0x22a   :  { %v199_v28 = vmul.f32 %v407_v27, %v195_v23  ;;  %389 = vmatmul.mubr.msk.f32.vlgmr.msra.gmra.mrb[2].mxu0 %vm202_vm2, %v200_v26 }
 0x22c   :  { %v201_v29 = vmul.f32 %v403_v18, %v199_v28 }
 0x22e   :  { %392 = vmatmul.mubr.msk.f32.vlgmr.msra.gmra.mrb[2].mxu1 %vm202_vm2, %v201_v29 }
 0x2fd   :  { %v277_v30 = vpop.f32.mrb[2].mxu0 }
 0x2fe   :  { %v278_v31 = vadd.f32 %v277_v30, %v27_v0  ;;  %v279_v32 = vpop.f32.mrb[3].mxu0 }
 0x2ff   :  { %v280_v33 = vadd.f32 %v279_v32, %v30_v2 }
 0x301   :  { %v364_v34 = vcombine.low %v278_v31, %v280_v33  ;;  %v355_v35 = vpop.f32.mrb[2].mxu1 }
 0x302   :  { %v356_v36 = vadd.f32 %v355_v35, %v28_v1  ;;  %v357_v37 = vpop.f32.mrb[3].mxu1 }
 0x303   :  { %368 = vst [vmem:[#allocation6] sm:$0xff] %v364_v34  ;;  %v358_v38 = vadd.f32 %v357_v37, %v491_v3 }
 0x305   :  { %v365_v39 = vcombine.low %v356_v36, %v358_v38 }
 0x307   :  { %369 = vst [vmem:[#allocation6 + $0x8] sm:$0xff] %v365_v39 }
 0x308   :  { %441 = shalt.err (!%p438_p12)
}
 0x309   :  { %s442_s28 = scalar_lea.hbm %s521_s2, 256 }
 0x30a   :  { %p443_p13 = scmp.ne.s32.totalorder %s521_s2, %s442_s28  ;;  %p446_p0 = scmp.lt.u32.totalorder %s442_s28, %s521_s2 }
 0x30c   :  { %p448_p1 = pnand %p446_p0, %p443_p13 }
 0x30e   :  { %451 = shalt.err (!%p448_p1)
}
 0x30f   :  { %381 = dma.vmem_to_hbm [thread:$0]  %s376_s25, 256, %s521_s2, [#allocation5], %s457_s19, %s457_s19, %s458_s20  }
 0x310   :  { %454 = dma.done.wait [#allocation5], 256  }
 0x311   :  { %455 = vsyncadd [#allocation5], 4294967040 }
 0x312   :  { %385 = vsyncpa [#allocation4], 1 }
 0x313   :  { %386 = vsyncpa [#allocation5], 1 }

</bundles_post_ra>
